<compile_context>
chip_gen: v7x
topology: tpu7x:2x2x1
jax: 0.10.0
libtpu: 0.0.40
codegen_flags: <defaults>
</compile_context>

<pallas_src>
import functools

import jax
import jax.numpy as jnp
from jax.experimental import pallas as pl
from jax.experimental.pallas import tpu as pltpu


def attention_kernel(h_ref, enc_ref, wh_t_ref, we_t_ref, b_ref, v_ref, out_ref,
                     *, temp):
    """One batch tile per grid step.

    h_ref    : (Bt, dec_hid)      decoder hidden state (batch tile)
    enc_ref  : (L, Bt, enc_in)    encoder features, seq-major (no wrapper transpose)
    wh_t_ref : (dec_hid, enc_hid) attn weight (hidden part), pre-transposed
    we_t_ref : (enc_in, enc_hid)  attn weight (encoder part), pre-transposed
    b_ref    : (1, enc_hid)       attn bias
    v_ref    : (1, enc_hid)       v weight
    out_ref  : (Bt, L)            attention probabilities
    """
    L, Bt, enc_in = enc_ref.shape
    enc_hid = wh_t_ref.shape[1]

    # hidden @ Wh^T + b is shared by every sentence position -> compute once.
    hb = jnp.dot(h_ref[...], wh_t_ref[...],
                 preferred_element_type=jnp.float32) + b_ref[...]       # (Bt, enc_hid)

    # One fused MXU matmul over ALL L positions at once.
    # (L, Bt, enc_in) -> (L*Bt, enc_in): leading-dim collapse, Bt % 8 == 0.
    enc2d = enc_ref[...].reshape(L * Bt, enc_in)
    e_proj = jnp.dot(enc2d, we_t_ref[...],
                     preferred_element_type=jnp.float32)                # (L*Bt, enc_hid)

    # Broadcast-add the hidden projection across L and apply tanh (EUP).
    energy = jnp.tanh(e_proj.reshape(L, Bt, enc_hid) + hb[None, :, :])  # (L, Bt, enc_hid)

    # self.v(energy): VPU multiply + lane reduce instead of an M=1 MXU matmul.
    scores_lb = jnp.sum(energy * v_ref[...], axis=-1)                   # (L, Bt)
    scores = scores_lb.T                                                # (Bt, L), small XLU transpose

    # Custom temperature softmax over L (NO max subtraction -> matches _softmax).
    if temp != 1.0:
        scores = scores * (1.0 / temp)
    e_x = jnp.exp(scores)
    out_ref[...] = e_x / jnp.sum(e_x, axis=-1, keepdims=True)


def attention_forward(hidden, encoder_outputs, params, temperature=1.0):
    """hidden: (1, B, dec_hid);  encoder_outputs: (L, B, enc_in). Returns (B, L)."""
    wh, we, bias, v = params["wh"], params["we"], params["b"], params["v"]
    L, B, enc_in = encoder_outputs.shape
    dec_hid = hidden.shape[-1]
    enc_hid = wh.shape[0]

    # Pre-transpose the weights ONCE so the kernel does plain A @ B.
    wh_t = jnp.asarray(wh, jnp.float32).T                    # (dec_hid, enc_hid)
    we_t = jnp.asarray(we, jnp.float32).T                    # (enc_in, enc_hid)
    bias2 = jnp.asarray(bias, jnp.float32).reshape(1, enc_hid)
    v2 = jnp.asarray(v, jnp.float32).reshape(1, enc_hid)

    h2 = jnp.asarray(hidden, jnp.float32).reshape(B, dec_hid)   # free reshape
    enc = jnp.asarray(encoder_outputs, jnp.float32)             # stays seq-major (L, B, enc_in)

    # Batch tile: multiple of 8 sublanes; cap so the double-buffered encoder
    # block stays small enough for v7x's 64 MiB VMEM as well as v5e/v6e.
    rows_cap = max(8, (4 * 1024 * 1024) // max(1, L * enc_in * 4))
    bt = min(max(B, 8), 512, rows_cap)
    bt = ((bt + 7) // 8) * 8
    b_pad = ((B + bt - 1) // bt) * bt
    if b_pad != B:
        h2 = jnp.pad(h2, ((0, b_pad - B), (0, 0)))
        enc = jnp.pad(enc, ((0, 0), (0, b_pad - B), (0, 0)))
    n_tiles = b_pad // bt

    flops = int(2 * b_pad * dec_hid * enc_hid
                + 2 * b_pad * L * enc_in * enc_hid
                + 4 * b_pad * L * enc_hid)
    transcendentals = int(b_pad * L * enc_hid + b_pad * L)
    bytes_accessed = int(4 * (b_pad * dec_hid + L * b_pad * enc_in
                              + dec_hid * enc_hid + enc_in * enc_hid
                              + 2 * enc_hid + b_pad * L))
    ce = pl.CostEstimate(flops=flops, transcendentals=transcendentals,
                         bytes_accessed=bytes_accessed)

    kernel = functools.partial(attention_kernel, temp=float(temperature))
    out = pl.pallas_call(
        kernel,
        out_shape=jax.ShapeDtypeStruct((b_pad, L), jnp.float32),
        grid_spec=pltpu.PrefetchScalarGridSpec(
            num_scalar_prefetch=0,
            grid=(n_tiles,),
            in_specs=[
                pl.BlockSpec((bt, dec_hid), lambda i: (i, 0)),       # hidden tile
                pl.BlockSpec((L, bt, enc_in), lambda i: (0, i, 0)),  # encoder tile (seq-major)
                pl.BlockSpec((dec_hid, enc_hid), lambda i: (0, 0)),  # Wh^T
                pl.BlockSpec((enc_in, enc_hid), lambda i: (0, 0)),   # We^T
                pl.BlockSpec((1, enc_hid), lambda i: (0, 0)),        # bias
                pl.BlockSpec((1, enc_hid), lambda i: (0, 0)),        # v
            ],
            out_specs=pl.BlockSpec((bt, L), lambda i: (i, 0)),       # (Bt, L) probs
        ),
        compiler_params=pltpu.CompilerParams(
            dimension_semantics=("parallel",)),
        cost_estimate=ce,
    )(h2, enc, wh_t, we_t, bias2, v2)
    return out[:B]


def reference_forward(hidden, encoder_outputs, W_attn, b_attn, v_w, temperature):
    """Pure-JAX mirror of the PyTorch forward (for verification)."""
    L = encoder_outputs.shape[0]
    h = jnp.transpose(hidden, (1, 0, 2))            # (B, 1, dec_hid)
    e = jnp.transpose(encoder_outputs, (1, 0, 2))   # (B, L, enc_in)
    h = jnp.tile(h, (1, L, 1))
    cat = jnp.concatenate([h, e], axis=2)           # (B, L, dec_hid + enc_in)
    energy = jnp.tanh(cat @ W_attn.T + b_attn)      # (B, L, enc_hid)
    att = (energy @ v_w.T)[..., 0]                  # (B, L)
    e_x = jnp.exp(att / temperature)
    return e_x / jnp.sum(e_x, axis=1, keepdims=True)


if __name__ == "__main__":
    # module hyper-params (small, consistent with __init__)
    enc_hid_dim = 32
    dec_hid_dim = 32
    is_bidirectional = 1
    temperature = 1.0
    enc_in = (1 + is_bidirectional) * enc_hid_dim   # 64

    B = 2      # batch
    L = 8      # sentence length

    key = jax.random.PRNGKey(0)
    k1, k2, k3, k4, k5 = jax.random.split(key, 5)

    # deterministic synthetic parameters (shapes match nn.Linear in __init__)
    W_attn = jax.random.normal(k1, (enc_hid_dim, dec_hid_dim + enc_in), jnp.float32) * 0.1
    b_attn = jax.random.normal(k2, (enc_hid_dim,), jnp.float32) * 0.1
    v_w = jax.random.normal(k3, (1, enc_hid_dim), jnp.float32) * 0.1

    # split concat-Linear: cat order is (hidden, encoder_outputs)
    params = {
        "wh": W_attn[:, :dec_hid_dim],
        "we": W_attn[:, dec_hid_dim:],
        "b": b_attn,
        "v": v_w,
    }

    # inputs, seq-major exactly as the PyTorch module expects
    hidden = jax.random.normal(k4, (1, B, dec_hid_dim), jnp.float32)
    encoder_outputs = jax.random.normal(k5, (L, B, enc_in), jnp.float32)

    out = attention_forward(hidden, encoder_outputs, params, temperature)
    out = jax.block_until_ready(out)

    ref = reference_forward(hidden, encoder_outputs, W_attn, b_attn, v_w, temperature)
    assert out.shape == (B, L)
    assert jnp.allclose(out, ref, atol=1e-5, rtol=1e-5), "mismatch vs reference"
    assert jnp.allclose(jnp.sum(out, axis=1), jnp.ones((B,)), atol=1e-5)

    print("KERNEL_OK")
</pallas_src>

<mosaic_0001>
module attributes {stable_mosaic.version = 11 : i64} {
  func.func @attention_kernel(%arg0: i32, %arg1: memref<8x32xf32, #tpu.memory_space<vmem>>, %arg2: memref<8x8x64xf32, #tpu.memory_space<vmem>>, %arg3: memref<32x32xf32, #tpu.memory_space<vmem>>, %arg4: memref<64x32xf32, #tpu.memory_space<vmem>>, %arg5: memref<1x32xf32, #tpu.memory_space<vmem>>, %arg6: memref<1x32xf32, #tpu.memory_space<vmem>>, %arg7: memref<8x8xf32, #tpu.memory_space<vmem>>) attributes {dimension_semantics = [#tpu.dimension_semantics<parallel>], iteration_bounds = array<i64: 1>, scalar_prefetch = 0 : i64, scratch_operands = 0 : i64, tpu.core_type = #tpu.core_type<tc>, window_params = [{transform_indices = @transform_0, window_bounds = array<i64: 8, 32>}, {transform_indices = @transform_1, window_bounds = array<i64: 8, 8, 64>}, {pipeline_mode = #tpu.pipeline_mode<synchronous>, transform_indices = @transform_2, window_bounds = array<i64: 32, 32>}, {pipeline_mode = #tpu.pipeline_mode<synchronous>, transform_indices = @transform_3, window_bounds = array<i64: 64, 32>}, {pipeline_mode = #tpu.pipeline_mode<synchronous>, transform_indices = @transform_4, window_bounds = array<i64: 1, 32>}, {pipeline_mode = #tpu.pipeline_mode<synchronous>, transform_indices = @transform_5, window_bounds = array<i64: 1, 32>}, {transform_indices = @transform_6, window_bounds = array<i64: 8, 8>}]} {
    %c0 = arith.constant 0 : index
    %c0_0 = arith.constant 0 : index
    %0 = vector.load %arg1[%c0, %c0_0] : memref<8x32xf32, #tpu.memory_space<vmem>>, vector<8x32xf32>
    %c0_1 = arith.constant 0 : index
    %c0_2 = arith.constant 0 : index
    %1 = vector.load %arg3[%c0_1, %c0_2] : memref<32x32xf32, #tpu.memory_space<vmem>>, vector<32x32xf32>
    %cst = arith.constant dense<0.000000e+00> : vector<8x32xf32>
    %2 = tpu.matmul %0, %1, %cst {dimension_numbers = #tpu.dot_dimension_numbers<[1], [0], [0], [1], [0, 0, 1, 1], [], []>} : vector<8x32xf32>, vector<32x32xf32>, vector<8x32xf32> -> vector<8x32xf32>
    %c0_3 = arith.constant 0 : index
    %c0_4 = arith.constant 0 : index
    %3 = vector.load %arg5[%c0_3, %c0_4] : memref<1x32xf32, #tpu.memory_space<vmem>>, vector<1x32xf32>
    %4 = vector.broadcast %3 : vector<1x32xf32> to vector<8x32xf32>
    %5 = arith.addf %2, %4 : vector<8x32xf32>
    %c0_5 = arith.constant 0 : index
    %c0_6 = arith.constant 0 : index
    %c0_7 = arith.constant 0 : index
    %6 = vector.load %arg2[%c0_5, %c0_6, %c0_7] : memref<8x8x64xf32, #tpu.memory_space<vmem>>, vector<8x8x64xf32>
    %7 = vector.shape_cast %6 : vector<8x8x64xf32> to vector<64x64xf32>
    %c0_8 = arith.constant 0 : index
    %c0_9 = arith.constant 0 : index
    %8 = vector.load %arg4[%c0_8, %c0_9] : memref<64x32xf32, #tpu.memory_space<vmem>>, vector<64x32xf32>
    %cst_10 = arith.constant dense<0.000000e+00> : vector<64x32xf32>
    %9 = tpu.matmul %7, %8, %cst_10 {dimension_numbers = #tpu.dot_dimension_numbers<[1], [0], [0], [1], [0, 0, 1, 1], [], []>} : vector<64x64xf32>, vector<64x32xf32>, vector<64x32xf32> -> vector<64x32xf32>
    %10 = vector.shape_cast %9 : vector<64x32xf32> to vector<8x8x32xf32>
    %11 = vector.shape_cast %5 : vector<8x32xf32> to vector<1x8x32xf32>
    %12 = vector.broadcast %11 : vector<1x8x32xf32> to vector<8x8x32xf32>
    %13 = arith.addf %10, %12 : vector<8x8x32xf32>
    %14 = math.tanh %13 : vector<8x8x32xf32>
    %c0_11 = arith.constant 0 : index
    %c0_12 = arith.constant 0 : index
    %15 = vector.load %arg6[%c0_11, %c0_12] : memref<1x32xf32, #tpu.memory_space<vmem>>, vector<1x32xf32>
    %16 = vector.shape_cast %15 : vector<1x32xf32> to vector<1x1x32xf32>
    %17 = vector.broadcast %16 : vector<1x1x32xf32> to vector<8x8x32xf32>
    %18 = arith.mulf %14, %17 : vector<8x8x32xf32>
    %cst_13 = arith.constant dense<0.000000e+00> : vector<8x8xf32>
    %19 = vector.multi_reduction <add>, %18, %cst_13 [2] : vector<8x8x32xf32> to vector<8x8xf32>
    %20 = tpu.transpose %19, [1, 0] : vector<8x8xf32> -> vector<8x8xf32>
    %21 = math.exp %20 : vector<8x8xf32>
    %cst_14 = arith.constant dense<0.000000e+00> : vector<8xf32>
    %22 = vector.multi_reduction <add>, %21, %cst_14 [1] : vector<8x8xf32> to vector<8xf32>
    %23 = vector.shape_cast %22 : vector<8xf32> to vector<8x1xf32>
    %24 = vector.broadcast %23 : vector<8x1xf32> to vector<8x8xf32>
    %25 = arith.divf %21, %24 : vector<8x8xf32>
    %c0_15 = arith.constant 0 : index
    %c0_16 = arith.constant 0 : index
    %26 = vector.load %arg7[%c0_15, %c0_16] : memref<8x8xf32, #tpu.memory_space<vmem>>, vector<8x8xf32>
    tpu.vector_store %arg7[%c0_15, %c0_16], %25 {strides = array<i32>} : memref<8x8xf32, #tpu.memory_space<vmem>>, vector<8x8xf32>,
    return
  }
  func.func @transform_0(%arg0: i32) -> (i32, i32) {
    %c0_i32 = arith.constant 0 : i32
    %c0_i32_0 = arith.constant 0 : i32
    return %arg0, %c0_i32 : i32, i32
  }
  func.func @transform_1(%arg0: i32) -> (i32, i32, i32) {
    %c0_i32 = arith.constant 0 : i32
    %c0_i32_0 = arith.constant 0 : i32
    %c0_i32_1 = arith.constant 0 : i32
    return %c0_i32, %arg0, %c0_i32_0 : i32, i32, i32
  }
  func.func @transform_2(%arg0: i32) -> (i32, i32) {
    %c0_i32 = arith.constant 0 : i32
    %c0_i32_0 = arith.constant 0 : i32
    %c0_i32_1 = arith.constant 0 : i32
    return %c0_i32, %c0_i32_0 : i32, i32
  }
  func.func @transform_3(%arg0: i32) -> (i32, i32) {
    %c0_i32 = arith.constant 0 : i32
    %c0_i32_0 = arith.constant 0 : i32
    %c0_i32_1 = arith.constant 0 : i32
    return %c0_i32, %c0_i32_0 : i32, i32
  }
  func.func @transform_4(%arg0: i32) -> (i32, i32) {
    %c0_i32 = arith.constant 0 : i32
    %c0_i32_0 = arith.constant 0 : i32
    %c0_i32_1 = arith.constant 0 : i32
    return %c0_i32, %c0_i32_0 : i32, i32
  }
  func.func @transform_5(%arg0: i32) -> (i32, i32) {
    %c0_i32 = arith.constant 0 : i32
    %c0_i32_0 = arith.constant 0 : i32
    %c0_i32_1 = arith.constant 0 : i32
    return %c0_i32, %c0_i32_0 : i32, i32
  }
  func.func @transform_6(%arg0: i32) -> (i32, i32) {
    %c0_i32 = arith.constant 0 : i32
    %c0_i32_0 = arith.constant 0 : i32
    return %arg0, %c0_i32 : i32, i32
  }
}

</mosaic_0001>

<bundles_post_ra>
// kernel: tpu_custom_call.1
= control target key start
LH: loop header
LB: loop body
LE: loop exit
PB: predicated region body
PF: predicated region fallthrough
CT: control target
= control target key end

     0   :  { %11 = vsyncpa [#allocation3], 0  ;;  %s757_s0 = inlined_call_operand.hbm [shape: f32[8,32], index: 0, kind: input, shape index: {}]   ;;  %s758_s1 = inlined_call_operand.vmem [shape: f32[8,8,64], index: 1, kind: input, shape index: {}]   ;;  %s759_s2 = inlined_call_operand.vmem [shape: f32[32,32], index: 2, kind: input, shape index: {}]   ;;  %s760_s3 = inlined_call_operand.vmem [shape: f32[64,32], index: 3, kind: input, shape index: {}]   ;;  %s761_s4 = inlined_call_operand.vmem [shape: f32[1,32], index: 4, kind: input, shape index: {}]   ;;  %s762_s5 = inlined_call_operand.vmem [shape: f32[1,32], index: 5, kind: input, shape index: {}]   ;;  %s763_s6 = inlined_call_operand.hbm [shape: f32[8,8], index: 6, kind: output, shape index: {}]  }
   0x1   :  { %12 = vsyncpa [#allocation4], 0  ;;  %s610_s21 = smov [#allocation2]   ;;  %s562_s25 = scalar_lea.hbm %s757_s0, 128 }
   0x2   :  { %s19_s22 = sshll.u32 %s610_s21, 4  ;;  %p563_p0 = scmp.ne.s32.totalorder %s757_s0, %s562_s25  ;;  %s20_s22 = int_to_ptr.vmem [resolvable:$true] %s19_s22 }
   0x3   :  { %p566_p1 = scmp.lt.u32.totalorder %s562_s25, %s757_s0 }
   0x5   :  { %p568_p2 = pnand %p566_p1, %p563_p0 }
   0x7   :  { %571 = shalt.err (!%p568_p2)
}
   0x8   :  { %s572_s30 = scalar_lea.vmem %s20_s22, 128  ;;  %p577_p4 = scmp.lt.s32.totalorder %s20_s22, %s20_s22 }
   0x9   :  { %p573_p3 = scmp.ne.s32.totalorder %s20_s22, %s572_s30  ;;  %p578_p5 = scmp.lt.s32.totalorder %s572_s30, %s572_s30 }
   0xb   :  { %p579_p6 = por %p578_p5, %p577_p4 }
   0xd   :  { %p580_p7 = pnand %p579_p6, %p573_p3 }
   0xf   :  { %583 = shalt.err (!%p580_p7)
}
  0x10   :  { %22 = dma.hbm_to_vmem [thread:$0]  %s757_s0, 128, %s20_s22, [#allocation3]  }
  0x11   :  { %606 = dma.done.wait [#allocation3], 128  }
  0x12   :  { %607 = vsyncadd [#allocation3], 4294967168  ;;  %v611_v0 = vmov 0.0|0.0   ;;  %vm612_vm0 = vmmov 0   ;;  %v613_v1 = vmov 0.0   ;;  %v37_v2 = vld [vmem:[%s759_s2] sm:$0xff] }
  0x13   :  { %507 = vmatprep.subr.bf16.mxu0 %v611_v0  ;;  %476 = vmatprep.mubr.msk.f32.mxu0 %vm612_vm0, %v613_v1  ;;  %v38_v3 = vld [vmem:[%s759_s2 + $0x8] sm:$0xff]  ;;  %v130_v4 = vld [vmem:[%s760_s3] sm:$0xff]  ;;  %v39_v7 = vld [vmem:[%s759_s2 + $0x10] sm:$0xff]  ;;  %vm138_vm1 = vcmask 523264   ;;  %vm48_vm2 = vcmask 261120   ;;  %vm365_vm3 = vcmask 1041409  }
  0x14   :  { %v508_v5 = vpack.c.bf16 %v38_v3, %v37_v2  ;;  %v131_v6 = vld [vmem:[%s760_s3 + $0x8] sm:$0xff]  ;;  %v40_v8 = vld [vmem:[%s759_s2 + $0x18] sm:$0xff]  ;;  %v132_v10 = vld [vmem:[%s760_s3 + $0x10] sm:$0xff]  ;;  %vm367_vm4 = vcmask 1042434   ;;  %vm369_vm5 = vcmask 1043459   ;;  %vm371_vm6 = vcmask 1044484  }
  0x15   :  { %v513_v9 = vpack.c.bf16 %v131_v6, %v130_v4  ;;  %v133_v11 = vld [vmem:[%s760_s3 + $0x18] sm:$0xff]  ;;  %v511_v12 = vpack.c.bf16 %v40_v8, %v39_v7  ;;  %v134_v14 = vld [vmem:[%s760_s3 + $0x20] sm:$0xff]  ;;  %v135_v15 = vld [vmem:[%s760_s3 + $0x28] sm:$0xff]  ;;  %vm373_vm7 = vcmask 1045509   ;;  %vm375_vm8 = vcmask 1046534  }
  0x16   :  { %509 = vmatpush3.bf16.msra.mxu0 %v508_v5  ;;  %v517_v13 = vpack.c.bf16 %v133_v11, %v132_v10  ;;  %v124_v16 = vld [vmem:[%s758_s1 + $0x10] sm:$0xff]  ;;  %v521_v17 = vpack.c.bf16 %v135_v15, %v134_v14  ;;  %v36_v18 = vld [vmem:[#allocation2] sm:$0xff]  ;;  %v137_v20 = vld [vmem:[%s760_s3 + $0x38] sm:$0xff]  ;;  %v331_v11 = vlaneseq  ;;  %vm377_vm9 = vcmask 1047559  }
  0x17   :  { %529 = vmatprep.subr.bf16.mxu1 %v513_v9  ;;  %510 = vmatprep.subr.bf16.mxu0 %v611_v0  ;;  %v136_v19 = vld [vmem:[%s760_s3 + $0x30] sm:$0xff]  ;;  %v122_v21 = vld [vmem:[%s758_s1] sm:$0xff]  ;;  %v125_v23 = vld [vmem:[%s758_s1 + $0x18] sm:$0xff]  ;;  %vm414_vm10 = vcmask 64512  }
  0x18   :  { %533 = vmatpush3.bf16.msra.mxu1 %v513_v9  ;;  %498 = vmatprep.mubr.msk.f32.mxu1 %vm138_vm1, %v124_v16  ;;  %v525_v22 = vpack.c.bf16 %v137_v20, %v136_v19  ;;  %v126_v24 = vld [vmem:[%s758_s1 + $0x20] sm:$0xff]  ;;  %v127_v25 = vld [vmem:[%s758_s1 + $0x28] sm:$0xff]  ;;  %v128_v26 = vld [vmem:[%s758_s1 + $0x30] sm:$0xff] }
  0x19   :  { %530 = vmatprep.subr.bf16.mxu1 %v517_v13  ;;  %v123_v27 = vld [vmem:[%s758_s1 + $0x8] sm:$0xff]  ;;  %v129_v28 = vld [vmem:[%s758_s1 + $0x38] sm:$0xff]  ;;  %v436_v31 = vld [vmem:[%s761_s4] ss:$0 sm:$0xff] }
  0x1a   :  { %512 = vmatpush3.bf16.msra.mxu0 %v511_v12  ;;  %v446_v49 = vld [vmem:[%s762_s5] ss:$0 sm:$0xff]  ;;  %v332_v12 = vand.u32 127, %v331_v11  ;;  %s614_s5 = smov [#allocation5]  }
  0x1b   :  { %514 = vmatprep.subr.bf16.mxu0 %v513_v9  ;;  %s427_s23 = sshll.u32 %s614_s5, 4  ;;  %s428_s23 = int_to_ptr.vmem [resolvable:$true] %s427_s23 }
  0x1c   :  { %534 = vmatpush3.bf16.msra.mxu1 %v517_v13  ;;  %s584_s24 = scalar_lea.vmem %s428_s23, 128  ;;  %p589_p9 = scmp.lt.s32.totalorder %s428_s23, %s428_s23 }
  0x1d   :  { %477 = vmatmul.mubr.msk.f32.vlgmr.msra.gmra.mrb[0].mxu0 %vm48_vm2, %v36_v18  ;;  %531 = vmatprep.subr.bf16.mxu1 %v521_v17  ;;  %p585_p8 = scmp.ne.s32.totalorder %s428_s23, %s584_s24  ;;  %p590_p10 = scmp.lt.s32.totalorder %s584_s24, %s584_s24 }
  0x1e   :  { %516 = vmatpush3.bf16.msra.mxu0 %v513_v9  ;;  %495 = vmatprep.mubr.msk.f32.mxu0 %vm138_vm1, %v122_v21 }
  0x1f   :  { %518 = vmatprep.subr.bf16.mxu0 %v517_v13  ;;  %p591_p11 = por %p590_p10, %p589_p9 }
  0x20   :  { %535 = vmatpush3.bf16.msra.mxu1 %v521_v17 }
  0x21   :  { %532 = vmatprep.subr.bf16.mxu1 %v525_v22  ;;  %p592_p12 = pnand %p591_p11, %p585_p8 }
  0x22   :  { %520 = vmatpush3.bf16.msra.mxu0 %v517_v13  ;;  %v334_v13 = vshrl.u32 %v331_v11, 7 }
  0x23   :  { %522 = vmatprep.subr.bf16.mxu0 %v521_v17 }
  0x24   :  { %536 = vmatpush3.bf16.msra.mxu1 %v525_v22  ;;  %v335_v16 = vsub.s32 %v332_v12, %v334_v13 }
  0x26   :  { %524 = vmatpush3.bf16.msra.mxu0 %v521_v17 }
  0x27   :  { %499 = vmatmul.mubr.msk.f32.vlgmr.msra.gmra.mrb[0].mxu1 %vm138_vm1, %v125_v23  ;;  %526 = vmatprep.subr.bf16.mxu0 %v525_v22 }
  0x28   :  { %501 = vmatprep.mubr.msk.f32.mxu1 %vm138_vm1, %v126_v24 }
  0x2a   :  { %528 = vmatpush3.bf16.msra.mxu0 %v525_v22 }
  0x2b   :  { %502 = vmatmul.mubr.msk.f32.gmra.mrb[2].mxu1 %vm138_vm1, %v127_v25 }
  0x2c   :  { %504 = vmatprep.mubr.msk.f32.mxu1 %vm138_vm1, %v128_v26 }
  0x2d   :  { %496 = vmatmul.mubr.msk.f32.vlgmr.msra.gmra.mrb[2].mxu0 %vm138_vm1, %v123_v27 }
  0x2f   :  { %505 = vmatmul.mubr.msk.f32.gmra.mrb[4].mxu1 %vm138_vm1, %v129_v28 }
  0xf0   :  { %v118_v29 = vpop.f32.mrb[0].mxu0 }
  0xf1   :  { %v478_v30 = vpop.f32.mrb[1].mxu0  ;;  %v119_v32 = vadd.f32 %v436_v31, %v118_v29 }
  0xfa   :  { %v500_v33 = vpop.f32.mrb[0].mxu1 }
  0xfb   :  { %v271_v34 = vadd.f32 %v500_v33, %v119_v32  ;;  %v239_v35 = vpop.f32.mrb[1].mxu1 }
  0xfc   :  { %v270_v36 = vadd.f32 %v239_v35, %v119_v32 }
  0xfd   :  { %542 = vtanh.f32 %v271_v34 }
  0xfe   :  { %544 = vtanh.f32 %v270_v36  ;;  %v503_v37 = vpop.f32.mrb[2].mxu1 }
  0xff   :  { %v273_v38 = vadd.f32 %v503_v37, %v119_v32  ;;  %v249_v39 = vpop.f32.mrb[3].mxu1 }
 0x100   :  { %v272_v40 = vadd.f32 %v249_v39, %v119_v32  ;;  %v497_v41 = vpop.f32.mrb[2].mxu0 }
 0x101   :  { %546 = vtanh.f32 %v273_v38  ;;  %v269_v42 = vadd.f32 %v497_v41, %v119_v32  ;;  %v229_v43 = vpop.f32.mrb[3].mxu0 }
 0x102   :  { %v268_v44 = vadd.f32 %v229_v43, %v119_v32  ;;  %v506_v45 = vpop.f32.mrb[4].mxu1 }
 0x103   :  { %548 = vtanh.f32 %v269_v42  ;;  %v275_v46 = vadd.f32 %v506_v45, %v119_v32  ;;  %v259_v47 = vpop.f32.mrb[5].mxu1 }
 0x104   :  { %550 = vtanh.f32 %v268_v44  ;;  %v274_v48 = vadd.f32 %v259_v47, %v119_v32 }
 0x105   :  { %552 = vtanh.f32 %v275_v46 }
 0x106   :  { %554 = vtanh.f32 %v272_v40 }
 0x107   :  { %v543_v50 = vpop.eup %542  ;;  %556 = vtanh.f32 %v274_v48 }
 0x108   :  { %v545_v51 = vpop.eup %544  ;;  %v294_v52 = vmul.f32 %v543_v50, %v446_v49 }
 0x109   :  { %v293_v54 = vmul.f32 %v545_v51, %v446_v49 }
 0x10a   :  { %v308_v53 = vsel %vm48_vm2, %v294_v52, 0.0 }
 0x10b   :  { %v547_v55 = vpop.eup %546  ;;  %309 = vadd.xlane.f32.xlu1 %v308_v53  ;;  %v305_v58 = vsel %vm48_vm2, %v293_v54, 0.0 }
 0x10c   :  { %v296_v60 = vmul.f32 %v547_v55, %v446_v49 }
 0x10d   :  { %v549_v56 = vpop.eup %548 }
 0x10e   :  { %v551_v57 = vpop.eup %550  ;;  %v292_v59 = vmul.f32 %v549_v56, %v446_v49  ;;  %v314_v1 = vsel %vm48_vm2, %v296_v60, 0.0 }
 0x10f   :  { %v553_v61 = vpop.eup %552  ;;  %306 = vadd.xlane.f32.xlu1 %v305_v58  ;;  %v291_v63 = vmul.f32 %v551_v57, %v446_v49 }
 0x110   :  { %v302_v62 = vsel %vm48_vm2, %v292_v59, 0.0  ;;  %v555_v0 = vpop.eup %554  ;;  %v298_v2 = vmul.f32 %v553_v61, %v446_v49 }
 0x111   :  { %303 = vadd.xlane.f32.xlu0 %v302_v62  ;;  %v299_v3 = vsel %vm48_vm2, %v291_v63, 0.0  ;;  %v295_v4 = vmul.f32 %v555_v0, %v446_v49  ;;  %v557_v5 = vpop.eup %556 }
 0x112   :  { %v320_v6 = vsel %vm48_vm2, %v298_v2, 0.0  ;;  %v297_v8 = vmul.f32 %v557_v5, %v446_v49 }
 0x113   :  { %315 = vadd.xlane.f32.xlu1 %v314_v1  ;;  %v311_v7 = vsel %vm48_vm2, %v295_v4, 0.0 }
 0x114   :  { %v317_v9 = vsel %vm48_vm2, %v297_v8, 0.0 }
 0x115   :  { %300 = vadd.xlane.f32.xlu0 %v299_v3 }
 0x117   :  { %321 = vadd.xlane.f32.xlu1 %v320_v6 }
 0x119   :  { %312 = vadd.xlane.f32.xlu0 %v311_v7 }
 0x11d   :  { %318 = vadd.xlane.f32.xlu0 %v317_v9 }
 0x198   :  { %v310_v10 = vpop.xlane.xlu1 %309 }
 0x199   :  { %v348_v22 = vrot.slane %v310_v10, %v335_v16 }
 0x19c   :  { %v307_v14 = vpop.xlane.xlu1 %306 }
 0x19d   :  { %v344_v21 = vrot.slane %v307_v14, %v335_v16 }
 0x19e   :  { %v304_v15 = vpop.xlane.xlu0 %303 }
 0x19f   :  { %v340_v18 = vrot.slane %v304_v15, %v335_v16 }
 0x1a0   :  { %v316_v19 = vpop.xlane.xlu1 %315 }
 0x1a1   :  { %v356_v30 = vrot.slane %v316_v19, %v335_v16 }
 0x1a2   :  { %v301_v17 = vpop.xlane.xlu0 %300 }
 0x1a3   :  { %v336_v20 = vrot.slane %v301_v17, %v335_v16 }
 0x1a4   :  { %v322_v28 = vpop.xlane.xlu1 %321 }
 0x1a5   :  { %v366_v23 = vsel %vm365_vm3, %v340_v18, %v336_v20  ;;  %v364_v33 = vrot.slane %v322_v28, %v335_v16 }
 0x1a6   :  { %v368_v24 = vsel %vm367_vm4, %v344_v21, %v366_v23  ;;  %v313_v25 = vpop.xlane.xlu0 %312 }
 0x1a7   :  { %v370_v26 = vsel %vm369_vm5, %v348_v22, %v368_v24  ;;  %v352_v27 = vrot.slane %v313_v25, %v335_v16 }
 0x1a9   :  { %v372_v29 = vsel %vm371_vm6, %v352_v27, %v370_v26 }
 0x1aa   :  { %v319_v31 = vpop.xlane.xlu0 %318  ;;  %v374_v34 = vsel %vm373_vm7, %v356_v30, %v372_v29 }
 0x1ab   :  { %v360_v32 = vrot.slane %v319_v31, %v335_v16 }
 0x1ad   :  { %v376_v35 = vsel %vm375_vm8, %v360_v32, %v374_v34 }
 0x1ae   :  { %v378_v36 = vsel %vm377_vm9, %v364_v33, %v376_v35 }
 0x1af   :  { %380 = vxpose.xlu0.b32.start.end [1/1] (short) (narrow) %v378_v36, 8 }
 0x22f   :  { %v396_v37 = vpop.trf.xlu0 }
 0x230   :  { %v412_v38 = vmul.f32 1.442695, %v396_v37 }
 0x232   :  { %558 = vpow2.f32 %v412_v38 }
 0x23c   :  { %v559_v39 = vpop.eup %558 }
 0x23d   :  { %v415_v40 = vsel %vm414_vm10, %v559_v39, 0.0 }
 0x23e   :  { %416 = vadd.xlane.f32.xlu1 %v415_v40 }
 0x2cb   :  { %v417_v41 = vpop.xlane.xlu1 %416 }
 0x2cc   :  { %560 = vrcp.f32 %v417_v41 }
 0x2d6   :  { %v561_v42 = vpop.eup %560 }
 0x2d7   :  { %v419_v43 = vmul.f32 %v561_v42, %v559_v39 }
 0x2d9   :  { %420 = vst.msk [vmem:[#allocation5] sm:$0xff] %vm414_vm10, %v419_v43 }
 0x2da   :  { %595 = shalt.err (!%p592_p12)
}
 0x2db   :  { %s596_s27 = scalar_lea.hbm %s763_s6, 128 }
 0x2dc   :  { %p597_p13 = scmp.ne.s32.totalorder %s763_s6, %s596_s27  ;;  %p600_p0 = scmp.lt.u32.totalorder %s596_s27, %s763_s6 }
 0x2de   :  { %p602_p1 = pnand %p600_p0, %p597_p13 }
 0x2e0   :  { %605 = shalt.err (!%p602_p1)
}
 0x2e1   :  { %430 = dma.vmem_to_hbm [thread:$0]  %s428_s23, 128, %s763_s6, [#allocation4]  }
 0x2e2   :  { %608 = dma.done.wait [#allocation4], 128  }
 0x2e3   :  { %609 = vsyncadd [#allocation4], 4294967168 }
 0x2e4   :  { %434 = vsyncpa [#allocation3], 1 }
 0x2e5   :  { %435 = vsyncpa [#allocation4], 1 }

</bundles_post_ra>
